<compile_context>
chip_gen: v5e
topology: v5e:2x2
jax: 0.10.0
libtpu: 0.0.40
codegen_flags: <defaults>
</compile_context>

<pallas_src>
import functools
import math

import jax
import jax.numpy as jnp
from jax.experimental import pallas as pl
from jax.experimental.pallas import tpu as pltpu


def _round_up(x: int, m: int) -> int:
    return ((x + m - 1) // m) * m


def _logprob_packed_kernel(z_ref, sel_ref, out_ref, *, log_norm_const):
    # z_ref: (tr, 128) -- each row holds P = 128//M consecutive latent vectors.
    # sel_ref: (128, P) 0/1 block-diagonal selector.  out_ref: (tr, P).
    z = z_ref[...].astype(jnp.float32)
    sq = z * z                                        # mean=0, std=1 (frozen)
    # Grouped lane-sum on the (otherwise idle) MXU; avoids P lane-padded XLU
    # reductions that would otherwise dominate this HBM-bound kernel.
    s = jnp.dot(sq, sel_ref[...], preferred_element_type=jnp.float32)
    out_ref[...] = -0.5 * s + log_norm_const


def _logprob_rowsum_kernel(z_ref, out_ref, *, log_norm_const):
    # Fallback when M does not divide 128.  z_ref: (tr, M), out_ref: (tr, 1).
    z = z_ref[...].astype(jnp.float32)
    s = jnp.sum(z * z, axis=-1, keepdims=True)
    out_ref[...] = -0.5 * s + log_norm_const


class GaussianPriorPallas:
    """JAX/Pallas equivalent of the PyTorch GaussianPrior module."""

    # ~2 MiB per (double-buffered) z tile: large enough to amortize the
    # ~0.35 us per-grid-step overhead (>=85% of HBM roofline), small enough
    # that the total footprint stays inside the default scoped-VMEM limits of
    # every chip generation (v5e 16 MiB, v6e/v7x 32 MiB).
    TARGET_TILE_BYTES = 2 << 20

    def __init__(self, M: int):
        self.M = M
        # nn.Parameter(..., requires_grad=False): frozen at construction.
        # NOTE: if these arrays are mutated later, log_prob keeps using the
        # identity specialization derived here (same "frozen" semantics as
        # the PyTorch module).
        self.mean = jnp.zeros((M,), jnp.float32)
        self.std = jnp.ones((M,), jnp.float32)
        self._identity = True                       # zero mean / unit std
        self.log_norm_const = float(-0.5 * M * math.log(2.0 * math.pi))
        # Lane-packing factor: M < 128 wastes 128-M lanes of every vreg; when
        # M divides 128 we pack P latent vectors per 128-lane row instead.
        self._pack = 128 // M if (M <= 128 and 128 % M == 0) else 1
        if self._pack > 1:
            P = self._pack
            self._selector = (
                jnp.arange(128)[:, None] // M == jnp.arange(P)[None, :]
            ).astype(jnp.float32)
        else:
            self._selector = None

    # PyTorch forward() returns the distribution object; this module plays
    # both roles and exposes .log_prob / .sample directly.
    def forward(self):
        return self

    __call__ = forward

    # ------------------------------------------------------------------ tiling
    @classmethod
    def _choose_tile(cls, rows: int, width: int, itemsize: int):
        # Sublane tiling requirement of the input dtype (f32: 8, bf16: 16,
        # int8/fp8: 32); also satisfies the f32 output tiling (8).
        align = max(8, 32 // itemsize)
        width_vmem = _round_up(width, 128)           # lanes pad to 128 in VMEM
        budget = cls.TARGET_TILE_BYTES // (width_vmem * itemsize)
        budget = max(align, (budget // align) * align)
        # Use >=2 grid steps when there is enough work so a v7x megacore can
        # shard the "parallel" axis over both TensorCores (no-op on v5e/v6e).
        half = _round_up(pl.cdiv(rows, 2), align)
        tr = int(min(budget, max(align, half), _round_up(rows, align)))
        return tr, int(pl.cdiv(rows, tr))

    @staticmethod
    def _vmem_limit(tr: int, width: int, p: int, itemsize: int, packed: bool):
        w_pad = _round_up(width, 128)
        p_pad = _round_up(p, 128)
        fp = 2 * tr * w_pad * itemsize               # double-buffered z tiles
        fp += 2 * tr * p_pad * 4                     # double-buffered out tiles
        if packed:
            fp += 2 * _round_up(width, 8) * p_pad * 4    # resident selector
        # Headroom for compiler-internal scratch; stays far below every
        # chip's physical VMEM (v7x: 64 MiB) at the 2 MiB tile target.
        return int(max(fp + (8 << 20), 16 << 20))

    # ---------------------------------------------------------------- log_prob
    def log_prob(self, z: jax.Array) -> jax.Array:
        M = self.M
        assert z.shape[-1] == M, f"latent dim mismatch: {z.shape[-1]} != {M}"
        lead_shape = z.shape[:-1]
        B = math.prod(lead_shape) if lead_shape else 1
        z2 = z.reshape(B, M)

        if not self._identity:
            # Never taken for GaussianPrior (frozen mean=0 / std=1); kept so a
            # subclass with different frozen params stays correct: standardize
            # once in the wrapper and reuse the unit-normal kernel.
            z2 = (z2.astype(jnp.float32) - self.mean[None, :]) / self.std[None, :]

        itemsize = jnp.dtype(z2.dtype).itemsize

        pack = self._pack if (self._pack > 1 and B % self._pack == 0) else 1
        if pack > 1:
            R, W, P = B // pack, 128, pack
            z_view = z2.reshape(R, W)                # free contiguous view
        else:
            R, W, P = B, M, 1
            z_view = z2

        tr, grid = self._choose_tile(R, W, itemsize)
        vmem_limit = self._vmem_limit(tr, W, P, itemsize, packed=pack > 1)

        common = dict(
            out_shape=jax.ShapeDtypeStruct((R, P), jnp.float32),
            grid=(grid,),
            out_specs=pl.BlockSpec((tr, P), lambda i: (i, 0)),
            compiler_params=pltpu.CompilerParams(
                dimension_semantics=("parallel",),
                vmem_limit_bytes=vmem_limit,
            ),
            cost_estimate=pl.CostEstimate(
                flops=3 * B * M + 2 * B,
                transcendentals=0,
                bytes_accessed=B * M * itemsize + B * 4,
            ),
        )

        if pack > 1:
            kernel = functools.partial(
                _logprob_packed_kernel, log_norm_const=self.log_norm_const)
            out = pl.pallas_call(
                kernel,
                in_specs=[
                    pl.BlockSpec((tr, W), lambda i: (i, 0)),
                    # Constant block index -> fetched once, stays resident.
                    pl.BlockSpec((W, P), lambda i: (0, 0)),
                ],
                **common,
            )(z_view, self._selector)
        else:
            kernel = functools.partial(
                _logprob_rowsum_kernel, log_norm_const=self.log_norm_const)
            out = pl.pallas_call(
                kernel,
                in_specs=[pl.BlockSpec((tr, W), lambda i: (i, 0))],
                **common,
            )(z_view)

        # (R, P) holds exactly B log-probs in row-major order.
        return out.reshape(lead_shape)

    # ------------------------------------------------------------------ sample
    def sample(self, key: jax.Array, sample_shape=()) -> jax.Array:
        # TODO(synk): sampling is a single jax.random.normal call with no
        # data-dependent hot loop worth a Pallas kernel; kept in plain JAX.
        shape = tuple(sample_shape) + (self.M,)
        return self.mean + self.std * jax.random.normal(key, shape, jnp.float32)


if __name__ == "__main__":
    M = 32
    prior = GaussianPriorPallas(M)

    def ref_log_prob(pr, z):
        zf = z.astype(jnp.float32)
        return jnp.sum(
            -0.5 * ((zf - pr.mean) / pr.std) ** 2
            - jnp.log(pr.std)
            - 0.5 * jnp.log(2.0 * jnp.pi),
            axis=-1,
        )

    key = jax.random.PRNGKey(0)
    k1, k2, k3, k4 = jax.random.split(key, 4)

    # MXU f32 matmuls may use reduced-precision passes; worst case ~0.2% per
    # squared term -> |err| <~ 0.03 on log-probs of magnitude ~45.
    packed_tol = dict(atol=5e-2, rtol=1e-3)

    # (1) Small batch, packed path (M=32 divides 128), single tile.
    z1 = jax.random.normal(k1, (8, M), dtype=jnp.float32)
    lp1 = jax.block_until_ready(prior().log_prob(z1))
    assert lp1.shape == (8,)
    assert jnp.allclose(lp1, ref_log_prob(prior, z1), **packed_tol)

    # (2) Multi-tile packed path with a ragged last block
    #     (B=200 -> 50 packed rows -> two 32-row tiles, second one partial).
    z2 = jax.random.normal(k2, (200, M), dtype=jnp.float32)
    lp2 = jax.block_until_ready(prior().log_prob(z2))
    assert lp2.shape == (200,)
    assert jnp.allclose(lp2, ref_log_prob(prior, z2), **packed_tol)

    # (3) bf16 latents (exercises the 16-row sublane alignment).
    z3 = jax.random.normal(k3, (64, M)).astype(jnp.bfloat16)
    lp3 = jax.block_until_ready(prior().log_prob(z3))
    assert lp3.shape == (64,)
    assert jnp.allclose(lp3, ref_log_prob(prior, z3), **packed_tol)

    # (4) M that does not divide 128 -> lane-reduction fallback kernel.
    prior48 = GaussianPriorPallas(48)
    z4 = jax.random.normal(k4, (16, 48), dtype=jnp.float32)
    lp4 = jax.block_until_ready(prior48().log_prob(z4))
    assert lp4.shape == (16,)
    assert jnp.allclose(lp4, ref_log_prob(prior48, z4), atol=1e-4, rtol=1e-5)

    print("KERNEL_OK")
</pallas_src>

<mosaic_0001>
module attributes {stable_mosaic.version = 11 : i64} {
  func.func @_logprob_packed_kernel(%arg0: i32, %arg1: memref<8x128xf32, #tpu.memory_space<vmem>>, %arg2: memref<128x4xf32, #tpu.memory_space<vmem>>, %arg3: memref<8x4xf32, #tpu.memory_space<vmem>>) attributes {dimension_semantics = [#tpu.dimension_semantics<parallel>], iteration_bounds = array<i64: 1>, scalar_prefetch = 0 : i64, scratch_operands = 0 : i64, tpu.core_type = #tpu.core_type<tc>, window_params = [{transform_indices = @transform_0, window_bounds = array<i64: 8, 128>}, {pipeline_mode = #tpu.pipeline_mode<synchronous>, transform_indices = @transform_1, window_bounds = array<i64: 128, 4>}, {transform_indices = @transform_2, window_bounds = array<i64: 8, 4>}]} {
    %c0 = arith.constant 0 : index
    %c0_0 = arith.constant 0 : index
    %0 = vector.load %arg1[%c0, %c0_0] : memref<8x128xf32, #tpu.memory_space<vmem>>, vector<8x128xf32>
    %1 = arith.mulf %0, %0 : vector<8x128xf32>
    %c0_1 = arith.constant 0 : index
    %c0_2 = arith.constant 0 : index
    %2 = vector.load %arg2[%c0_1, %c0_2] : memref<128x4xf32, #tpu.memory_space<vmem>>, vector<128x4xf32>
    %cst = arith.constant dense<0.000000e+00> : vector<8x4xf32>
    %3 = tpu.matmul %1, %2, %cst {dimension_numbers = #tpu.dot_dimension_numbers<[1], [0], [0], [1], [0, 0, 1, 1], [], []>} : vector<8x128xf32>, vector<128x4xf32>, vector<8x4xf32> -> vector<8x4xf32>
    %cst_3 = arith.constant -5.000000e-01 : f32
    %4 = vector.broadcast %cst_3 : f32 to vector<8x4xf32>
    %5 = arith.mulf %4, %3 : vector<8x4xf32>
    %cst_4 = arith.constant -29.4060326 : f32
    %6 = vector.broadcast %cst_4 : f32 to vector<8x4xf32>
    %7 = arith.addf %5, %6 : vector<8x4xf32>
    %c0_5 = arith.constant 0 : index
    %c0_6 = arith.constant 0 : index
    %8 = vector.load %arg3[%c0_5, %c0_6] : memref<8x4xf32, #tpu.memory_space<vmem>>, vector<8x4xf32>
    tpu.vector_store %arg3[%c0_5, %c0_6], %7 {strides = array<i32>} : memref<8x4xf32, #tpu.memory_space<vmem>>, vector<8x4xf32>,
    return
  }
  func.func @transform_0(%arg0: i32) -> (i32, i32) {
    %c0_i32 = arith.constant 0 : i32
    %c0_i32_0 = arith.constant 0 : i32
    return %arg0, %c0_i32 : i32, i32
  }
  func.func @transform_1(%arg0: i32) -> (i32, i32) {
    %c0_i32 = arith.constant 0 : i32
    %c0_i32_0 = arith.constant 0 : i32
    %c0_i32_1 = arith.constant 0 : i32
    return %c0_i32, %c0_i32_0 : i32, i32
  }
  func.func @transform_2(%arg0: i32) -> (i32, i32) {
    %c0_i32 = arith.constant 0 : i32
    %c0_i32_0 = arith.constant 0 : i32
    return %arg0, %c0_i32 : i32, i32
  }
}

</mosaic_0001>

<bundles_post_ra>
// kernel: tpu_custom_call.1
= control target key start
LH: loop header
LB: loop body
LE: loop exit
PB: predicated region body
PF: predicated region fallthrough
CT: control target
= control target key end

     0   :  { %7 = vsyncpa [#allocation3], 0  ;;  %vm52_vm0 = vcmask 31744   ;;  %s173_s0 = inlined_call_operand.vmem [shape: f32[2,128], index: 0, kind: input, shape index: {}]   ;;  %s174_s1 = inlined_call_operand.vmem [shape: f32[128,4], index: 1, kind: input, shape index: {}]   ;;  %s175_s2 = inlined_call_operand.hbm [shape: f32[2,4], index: 2, kind: output, shape index: {}]  }
   0x1   :  { %v29_v0 = vld [vmem:[%s174_s1 + $0x78] sm:$0xff]  ;;  %v28_v1 = vld [vmem:[%s174_s1 + $0x70] sm:$0xff]  ;;  %v27_v2 = vld [vmem:[%s174_s1 + $0x68] sm:$0xff] }
   0x2   :  { %30 = vmatpush.msra.mxu0 %v29_v0  ;;  %v26_v3 = vld [vmem:[%s174_s1 + $0x60] sm:$0xff]  ;;  %v25_v4 = vld [vmem:[%s174_s1 + $0x58] sm:$0xff]  ;;  %v24_v5 = vld [vmem:[%s174_s1 + $0x50] sm:$0xff] }
   0x3   :  { %v23_v6 = vld [vmem:[%s174_s1 + $0x48] sm:$0xff]  ;;  %v22_v7 = vld [vmem:[%s174_s1 + $0x40] sm:$0xff]  ;;  %v21_v8 = vld [vmem:[%s174_s1 + $0x38] sm:$0xff] }
   0x4   :  { %31 = vmatpush.msra.mxu0 %v28_v1  ;;  %v20_v9 = vld [vmem:[%s174_s1 + $0x30] sm:$0xff]  ;;  %v19_v10 = vld [vmem:[%s174_s1 + $0x28] sm:$0xff]  ;;  %v18_v11 = vld [vmem:[%s174_s1 + $0x20] sm:$0xff] }
   0x5   :  { %v17_v12 = vld [vmem:[%s174_s1 + $0x18] sm:$0xff]  ;;  %v16_v13 = vld [vmem:[%s174_s1 + $0x10] sm:$0xff]  ;;  %v12_v14 = vld [vmem:[%s173_s0] sm:$0xff] }
   0x6   :  { %32 = vmatpush.msra.mxu0 %v27_v2  ;;  %v15_v15 = vld [vmem:[%s174_s1 + $0x8] sm:$0xff]  ;;  %v14_v16 = vld [vmem:[%s174_s1] sm:$0xff]  ;;  %v13_v17 = vmul.f32 %v12_v14, %v12_v14 }
   0x8   :  { %33 = vmatpush.msra.mxu0 %v26_v3 }
   0xa   :  { %34 = vmatpush.msra.mxu0 %v25_v4 }
   0xc   :  { %35 = vmatpush.msra.mxu0 %v24_v5 }
   0xe   :  { %36 = vmatpush.msra.mxu0 %v23_v6 }
  0x10   :  { %37 = vmatpush.msra.mxu0 %v22_v7 }
  0x12   :  { %38 = vmatpush.msra.mxu0 %v21_v8 }
  0x14   :  { %39 = vmatpush.msra.mxu0 %v20_v9 }
  0x16   :  { %40 = vmatpush.msra.mxu0 %v19_v10 }
  0x18   :  { %41 = vmatpush.msra.mxu0 %v18_v11 }
  0x1a   :  { %42 = vmatpush.msra.mxu0 %v17_v12 }
  0x1c   :  { %43 = vmatpush.msra.mxu0 %v16_v13 }
  0x1e   :  { %44 = vmatpush.msra.mxu0 %v15_v15 }
  0x20   :  { %45 = vmatpush.msra.mxu0 %v14_v16 }
  0x21   :  { %46 = vmatmul.f32.vlgmr.msra.gmra.mxu0 %v13_v17 }
  0x9e   :  { %v47_v18 = vpop.f32.mrf.mxu0 }
  0x9f   :  { %v50_v19 = vmul.f32 -0.5, %v47_v18 }
  0xa1   :  { %v51_v20 = vadd.f32 -29.406033, %v50_v19 }
  0xa3   :  { %53 = vst.msk [vmem:[#allocation2] sm:$0xff] %vm52_vm0, %v51_v20 }
  0xa4   :  { %57 = vsyncadd [#allocation3], 96  ;;  %s60_s16 = sshll.u32 %s175_s2, 4  ;;  %s101_s17 = smov [#allocation2]   ;;  %s61_s16 = int_to_ptr.hbm [resolvable:$true] %s60_s16 }
  0xa5   :  { %s58_s18 = sshll.u32 %s101_s17, 4  ;;  %s102_s19 = smov 32   ;;  %s59_s18 = int_to_ptr.vmem [resolvable:$true] %s58_s18 }
  0xa6   :  { %s103_s1 = smov 2  }
  0xa7   :  { %66 = dma.vmem_to_hbm [thread:$0]  %s59_s18, 32, %s61_s16, [#allocation3], %s102_s19, %s102_s19, %s103_s1  }
  0xa8   :  { %99 = dma.done.wait [#allocation3], 128  }
  0xa9   :  { %100 = vsyncadd [#allocation3], 4294967168 }
  0xaa   :  { %71 = vsyncpa [#allocation3], 1 }

</bundles_post_ra>
